<compile_context>
chip_gen: v6e
topology: v6e:2x2x1
jax: 0.10.0
libtpu: 0.0.40
codegen_flags: <defaults>
</compile_context>

<pallas_src>
import functools

import jax
import jax.numpy as jnp
from jax.experimental import pallas as pl
from jax.experimental.pallas import tpu as pltpu  # noqa: F401  (kept for extensions)


def _expert_group_kernel(n_layers, *refs):
    """Single invocation: run all experts' fused MLP on the whole batch.

    refs = (x_ref, w_0..w_{L-1}, b_0..b_{L-1}, o_ref)
      x_ref : (B, D)                        VMEM
      w_0   : (D, E*H1)                     VMEM  (column-concatenated experts)
      w_l   : (E*H_{l-1}, E*H_l), l >= 1    VMEM  (block-diagonal experts)
      b_l   : (1, E*H_l)                    VMEM
      o_ref : (B, E*H_last)                 VMEM  (lane-dense slab)
    """
    x_ref = refs[0]
    w_refs = refs[1:1 + n_layers]
    b_refs = refs[1 + n_layers:1 + 2 * n_layers]
    o_ref = refs[1 + 2 * n_layers]

    h = x_ref[...]
    for w_ref, b_ref in zip(w_refs, b_refs):
        h = jnp.dot(h, w_ref[...], preferred_element_type=jnp.float32)
        h = jnp.maximum(h + b_ref[...], 0.0)   # Linear bias + nn.ReLU
    o_ref[...] = h.astype(o_ref.dtype)


def _block_diag(w):
    """(E, H_in, H_out) per-expert weights -> (E*H_in, E*H_out) block-diagonal."""
    E, H_in, H_out = w.shape
    bd = jnp.zeros((E, H_in, E, H_out), w.dtype)
    bd = bd.at[jnp.arange(E), :, jnp.arange(E), :].set(w)
    return bd.reshape(E * H_in, E * H_out)


def pack_params(weights, biases):
    """Pack per-expert params (done once, outside the kernel).

    weights[l]: (E, d_in_l, d_out_l); biases[l]: (E, 1, d_out_l)
    Returns:
      packed_ws[0]: (D, E*H1)        -- experts concatenated along output axis
      packed_ws[l]: (E*H_{l-1}, E*H_l) block-diagonal, l >= 1
      packed_bs[l]: (1, E*H_l)
    """
    E = weights[0].shape[0]
    packed_ws, packed_bs = [], []
    for li, (w, b) in enumerate(zip(weights, biases)):
        _, d_in, d_out = w.shape
        if li == 0:
            pw = jnp.transpose(w, (1, 0, 2)).reshape(d_in, E * d_out)
        else:
            pw = _block_diag(w)
        packed_ws.append(pw)
        packed_bs.append(b.reshape(1, E * d_out))
    return packed_ws, packed_bs


def expert_group_forward(x, packed_ws, packed_bs, expert_num):
    """x: (B, D) f32; packed_* from pack_params.

    Returns (B, E, layers[-1]) matching torch.cat([e(x).unsqueeze(1) ...], dim=1).
    """
    B = x.shape[0]
    EH_last = packed_ws[-1].shape[-1]
    n_layers = len(packed_ws)

    kernel = functools.partial(_expert_group_kernel, n_layers)

    # Single invocation, no grid: everything (~40 KB) lives in VMEM as whole-array
    # blocks. Output slab (B, E*H_last) is lane-dense (last dim = 128 here).
    out_slab = pl.pallas_call(
        kernel,
        out_shape=jax.ShapeDtypeStruct((B, EH_last), x.dtype),
    )(x, *packed_ws, *packed_bs)

    # Contiguous reshape (free) -> PyTorch layout (B, E, H_last).
    return out_slab.reshape(B, expert_num, EH_last // expert_num)


def init_params(key, input_dim, layers, expert_num):
    """Deterministic synthetic parameters (stacked per expert, torch-Linear style)."""
    weights, biases = [], []
    d_in = input_dim
    for d_out in layers:
        kw, kb, key = jax.random.split(key, 3)
        scale = 1.0 / jnp.sqrt(jnp.float32(d_in))
        w = jax.random.uniform(kw, (expert_num, d_in, d_out),
                               jnp.float32, -scale, scale)
        b = jax.random.uniform(kb, (expert_num, 1, d_out),
                               jnp.float32, -scale, scale)
        weights.append(w)
        biases.append(b)
        d_in = d_out
    return weights, biases


def reference_forward(x, weights, biases):
    """Pure-JAX reference of the ExpertGroup forward (ReLU MLP per expert)."""
    outs = []
    E = weights[0].shape[0]
    for e in range(E):
        h = x
        for w, b in zip(weights, biases):
            h = jnp.maximum(h @ w[e] + b[e], 0.0)
        outs.append(h[:, None, :])
    return jnp.concatenate(outs, axis=1)


if __name__ == "__main__":
    # Small shapes implied by the module: x is (batch, input_dim).
    batch = 8
    input_dim = 32
    layers = [64, 32]
    expert_num = 4

    key = jax.random.PRNGKey(0)
    kx, kp = jax.random.split(key)
    x = jax.random.normal(kx, (batch, input_dim), jnp.float32)
    weights, biases = init_params(kp, input_dim, layers, expert_num)

    # Pack once on the host, then run the fused kernel.
    packed_ws, packed_bs = pack_params(weights, biases)
    out = expert_group_forward(x, packed_ws, packed_bs, expert_num)
    out = jax.block_until_ready(out)

    ref = reference_forward(x, weights, biases)
    assert out.shape == (batch, expert_num, layers[-1]), out.shape
    assert jnp.allclose(out, ref, atol=1e-5, rtol=1e-5), "mismatch vs reference"

    print("KERNEL_OK")
</pallas_src>

<mosaic_0001>
module attributes {stable_mosaic.version = 11 : i64} {
  func.func @_expert_group_kernel(%arg0: memref<8x32xf32, #tpu.memory_space<vmem>>, %arg1: memref<32x256xf32, #tpu.memory_space<vmem>>, %arg2: memref<256x128xf32, #tpu.memory_space<vmem>>, %arg3: memref<1x256xf32, #tpu.memory_space<vmem>>, %arg4: memref<1x128xf32, #tpu.memory_space<vmem>>, %arg5: memref<8x128xf32, #tpu.memory_space<vmem>>) attributes {dimension_semantics = [], scalar_prefetch = 0 : i64, scratch_operands = 0 : i64, tpu.core_type = #tpu.core_type<tc>} {
    %c0 = arith.constant 0 : index
    %c0_0 = arith.constant 0 : index
    %0 = vector.load %arg0[%c0, %c0_0] : memref<8x32xf32, #tpu.memory_space<vmem>>, vector<8x32xf32>
    %c0_1 = arith.constant 0 : index
    %c0_2 = arith.constant 0 : index
    %1 = vector.load %arg1[%c0_1, %c0_2] : memref<32x256xf32, #tpu.memory_space<vmem>>, vector<32x256xf32>
    %cst = arith.constant dense<0.000000e+00> : vector<8x256xf32>
    %2 = tpu.matmul %0, %1, %cst {dimension_numbers = #tpu.dot_dimension_numbers<[1], [0], [0], [1], [0, 0, 1, 1], [], []>} : vector<8x32xf32>, vector<32x256xf32>, vector<8x256xf32> -> vector<8x256xf32>
    %c0_3 = arith.constant 0 : index
    %c0_4 = arith.constant 0 : index
    %3 = vector.load %arg3[%c0_3, %c0_4] : memref<1x256xf32, #tpu.memory_space<vmem>>, vector<1x256xf32>
    %4 = vector.broadcast %3 : vector<1x256xf32> to vector<8x256xf32>
    %5 = arith.addf %2, %4 : vector<8x256xf32>
    %cst_5 = arith.constant 0.000000e+00 : f32
    %6 = vector.broadcast %cst_5 : f32 to vector<8x256xf32>
    %7 = arith.maximumf %5, %6 : vector<8x256xf32>
    %c0_6 = arith.constant 0 : index
    %c0_7 = arith.constant 0 : index
    %8 = vector.load %arg2[%c0_6, %c0_7] : memref<256x128xf32, #tpu.memory_space<vmem>>, vector<256x128xf32>
    %cst_8 = arith.constant dense<0.000000e+00> : vector<8x128xf32>
    %9 = tpu.matmul %7, %8, %cst_8 {dimension_numbers = #tpu.dot_dimension_numbers<[1], [0], [0], [1], [0, 0, 1, 1], [], []>} : vector<8x256xf32>, vector<256x128xf32>, vector<8x128xf32> -> vector<8x128xf32>
    %c0_9 = arith.constant 0 : index
    %c0_10 = arith.constant 0 : index
    %10 = vector.load %arg4[%c0_9, %c0_10] : memref<1x128xf32, #tpu.memory_space<vmem>>, vector<1x128xf32>
    %11 = vector.broadcast %10 : vector<1x128xf32> to vector<8x128xf32>
    %12 = arith.addf %9, %11 : vector<8x128xf32>
    %cst_11 = arith.constant 0.000000e+00 : f32
    %13 = vector.broadcast %cst_11 : f32 to vector<8x128xf32>
    %14 = arith.maximumf %12, %13 : vector<8x128xf32>
    %c0_12 = arith.constant 0 : index
    %c0_13 = arith.constant 0 : index
    %15 = vector.load %arg5[%c0_12, %c0_13] : memref<8x128xf32, #tpu.memory_space<vmem>>, vector<8x128xf32>
    tpu.vector_store %arg5[%c0_12, %c0_13], %14 {strides = array<i32>} : memref<8x128xf32, #tpu.memory_space<vmem>>, vector<8x128xf32>,
    return
  }
}

</mosaic_0001>

<bundles_post_ra>
// kernel: tpu_custom_call.1
= control target key start
LH: loop header
LB: loop body
LE: loop exit
PB: predicated region body
PF: predicated region fallthrough
CT: control target
= control target key end

     0   :  { %10 = vsyncpa [#allocation3], 0  ;;  %s474_s0 = inlined_call_operand.hbm [shape: f32[8,32], index: 0, kind: input, shape index: {}]   ;;  %s475_s1 = inlined_call_operand.hbm [shape: f32[32,256], index: 1, kind: input, shape index: {}]   ;;  %s476_s2 = inlined_call_operand.hbm [shape: f32[256,128], index: 2, kind: input, shape index: {}]   ;;  %s477_s3 = inlined_call_operand.vmem [shape: f32[1,256], index: 3, kind: input, shape index: {}]   ;;  %s478_s4 = inlined_call_operand.vmem [shape: f32[1,128], index: 4, kind: input, shape index: {}]   ;;  %s479_s5 = inlined_call_operand.hbm [shape: f32[8,128], index: 5, kind: output, shape index: {}]  }
   0x1   :  { %11 = vsyncpa [#allocation6], 0 }
   0x2   :  { %12 = vsyncpa [#allocation4], 0  ;;  %s417_s18 = smov [#allocation5]  }
   0x3   :  { %s28_s19 = sshll.u32 %s417_s18, 4  ;;  %s29_s19 = int_to_ptr.vmem [resolvable:$true] %s28_s19 }
   0x4   :  { %s339_s20 = scalar_lea.vmem %s29_s19, 1024  ;;  %p344_p1 = scmp.lt.s32.totalorder %s29_s19, %s29_s19 }
   0x5   :  { %p340_p0 = scmp.ne.s32.totalorder %s29_s19, %s339_s20  ;;  %p345_p2 = scmp.lt.s32.totalorder %s339_s20, %s339_s20 }
   0x7   :  { %p346_p3 = por %p345_p2, %p344_p1 }
   0x9   :  { %p347_p4 = pnand %p346_p3, %p340_p0 }
   0xb   :  { %350 = shalt.err (!%p347_p4)
}
   0xc   :  { %s418_s21 = smov 256   ;;  %s419_s22 = smov 16  }
   0xd   :  { %34 = dma.hbm_to_vmem [thread:$0]  %s475_s1, 1024, %s29_s19, [#allocation6], %s418_s21, %s418_s21, %s419_s22  }
   0xe   :  { %s420_s25 = smov [#allocation2]   ;;  %s421_s27 = smov [#allocation7]  }
   0xf   :  { %s19_s26 = sshll.u32 %s420_s25, 4  ;;  %s40_s28 = sshll.u32 %s421_s27, 4  ;;  %s20_s26 = int_to_ptr.vmem [resolvable:$true] %s19_s26  ;;  %s41_s28 = int_to_ptr.vmem [resolvable:$true] %s40_s28 }
  0x10   :  { %s359_s29 = scalar_lea.vmem %s20_s26, 128  ;;  %p364_p6 = scmp.lt.s32.totalorder %s20_s26, %s20_s26 }
  0x11   :  { %p360_p5 = scmp.ne.s32.totalorder %s20_s26, %s359_s29  ;;  %p365_p7 = scmp.lt.s32.totalorder %s359_s29, %s359_s29 }
  0x13   :  { %p366_p8 = por %p365_p7, %p364_p6 }
  0x15   :  { %p367_p9 = pnand %p366_p8, %p360_p5 }
  0x17   :  { %370 = shalt.err (!%p367_p9)
}
  0x18   :  { %22 = dma.hbm_to_vmem [thread:$0]  %s474_s0, 128, %s20_s26, [#allocation3]  }
  0x19   :  { %s379_s7 = scalar_lea.vmem %s41_s28, 4096  ;;  %p384_p11 = scmp.lt.s32.totalorder %s41_s28, %s41_s28 }
  0x1a   :  { %p380_p10 = scmp.ne.s32.totalorder %s41_s28, %s379_s7  ;;  %p385_p12 = scmp.lt.s32.totalorder %s379_s7, %s379_s7 }
  0x1c   :  { %p386_p13 = por %p385_p12, %p384_p11 }
  0x1e   :  { %p387_p0 = pnand %p386_p13, %p380_p10 }
  0x20   :  { %390 = shalt.err (!%p387_p0)
}
  0x21   :  { %s422_s1 = smov 128   ;;  %s423_s8 = smov 8  }
  0x22   :  { %46 = dma.hbm_to_vmem [thread:$0]  %s476_s2, 4096, %s41_s28, [#allocation6], %s422_s1, %s422_s1, %s423_s8  }
  0x23   :  { %411 = dma.done.wait [#allocation3], 128  }
  0x24   :  { %412 = vsyncadd [#allocation3], 4294967168 }
  0x25   :  { %413 = dma.done.wait [#allocation6], 5120  }
  0x26   :  { %414 = vsyncadd [#allocation6], 4294962176  ;;  %v424_v0 = vmov 0.0   ;;  %v68_v1 = vld [vmem:[#allocation5 + $0x38] sm:$0xff]  ;;  %v67_v2 = vld [vmem:[#allocation5 + $0x30] sm:$0xff]  ;;  %vm81_vm0 = vcmask 261120   ;;  %v71_v42 = vlaneseq }
  0x27   :  { %149 = vmatprep.mubr.f32.mxu0 %v424_v0  ;;  %v66_v3 = vld [vmem:[#allocation5 + $0x28] sm:$0xff]  ;;  %109 = vmatprep.subr.mxu0 %v68_v1  ;;  %v65_v4 = vld [vmem:[#allocation5 + $0x20] sm:$0xff]  ;;  %v64_v5 = vld [vmem:[#allocation5 + $0x18] sm:$0xff]  ;;  %s425_s13 = smov [#allocation8]  }
  0x28   :  { %110 = vmatpush1.msra.mxu0 %v67_v2  ;;  %v63_v6 = vld [vmem:[#allocation5 + $0x10] sm:$0xff]  ;;  %v189_v7 = vld [vmem:[#allocation7 + $0xf8] sm:$0xff]  ;;  %v62_v10 = vld [vmem:[#allocation5 + $0x8] sm:$0xff]  ;;  %v72_v43 = vshrl.u32 %v71_v42, 7 }
  0x29   :  { %111 = vmatprep.subr.mxu0 %v66_v3  ;;  %v173_v8 = vld [vmem:[#allocation7 + $0x78] sm:$0xff]  ;;  %v188_v9 = vld [vmem:[#allocation7 + $0xf0] sm:$0xff]  ;;  %287 = vmatprep.subr.mxu1 %v189_v7  ;;  %v61_v12 = vld [vmem:[#allocation5] sm:$0xff] }
  0x2a   :  { %112 = vmatpush1.msra.mxu0 %v65_v4  ;;  %v172_v11 = vld [vmem:[#allocation7 + $0x70] sm:$0xff]  ;;  %288 = vmatpush3.msra.mxu1 %v173_v8  ;;  %v187_v13 = vld [vmem:[#allocation7 + $0xe8] sm:$0xff]  ;;  %v60_v14 = vld [vmem:[#allocation2] sm:$0xff]  ;;  %v73_v44 = vsub.s32 0, %v72_v43  ;;  %v77_v46 = vsub.s32 1, %v72_v43 }
  0x2b   :  { %113 = vmatprep.subr.mxu0 %v64_v5  ;;  %289 = vmatprep.subr.mxu1 %v188_v9  ;;  %v171_v15 = vld [vmem:[#allocation7 + $0x68] sm:$0xff]  ;;  %v186_v16 = vld [vmem:[#allocation7 + $0xe0] sm:$0xff]  ;;  %v185_v18 = vld [vmem:[#allocation7 + $0xd8] sm:$0xff] }
  0x2c   :  { %114 = vmatpush1.msra.mxu0 %v63_v6  ;;  %290 = vmatpush3.msra.mxu1 %v172_v11  ;;  %v170_v17 = vld [vmem:[#allocation7 + $0x60] sm:$0xff]  ;;  %v169_v19 = vld [vmem:[#allocation7 + $0x58] sm:$0xff]  ;;  %v184_v20 = vld [vmem:[#allocation7 + $0xd0] sm:$0xff] }
  0x2d   :  { %115 = vmatprep.subr.mxu0 %v62_v10  ;;  %291 = vmatprep.subr.mxu1 %v187_v13  ;;  %v168_v21 = vld [vmem:[#allocation7 + $0x50] sm:$0xff]  ;;  %v183_v22 = vld [vmem:[#allocation7 + $0xc8] sm:$0xff]  ;;  %v182_v24 = vld [vmem:[#allocation7 + $0xc0] sm:$0xff] }
  0x2e   :  { %116 = vmatpush1.msra.mxu0 %v61_v12  ;;  %292 = vmatpush3.msra.mxu1 %v171_v15  ;;  %v167_v23 = vld [vmem:[#allocation7 + $0x48] sm:$0xff]  ;;  %v166_v25 = vld [vmem:[#allocation7 + $0x40] sm:$0xff]  ;;  %v181_v26 = vld [vmem:[#allocation7 + $0xb8] sm:$0xff] }
  0x2f   :  { %285 = vmatmul.mubr.msk.f32.vlgmr.msra.gmra.mxu0 %vm81_vm0, %v60_v14  ;;  %293 = vmatprep.subr.mxu1 %v186_v16  ;;  %v165_v27 = vld [vmem:[#allocation7 + $0x38] sm:$0xff]  ;;  %v180_v28 = vld [vmem:[#allocation7 + $0xb0] sm:$0xff]  ;;  %v179_v30 = vld [vmem:[#allocation7 + $0xa8] sm:$0xff] }
  0x30   :  { %294 = vmatpush3.msra.mxu1 %v170_v17  ;;  %v164_v29 = vld [vmem:[#allocation7 + $0x30] sm:$0xff]  ;;  %v163_v31 = vld [vmem:[#allocation7 + $0x28] sm:$0xff]  ;;  %v178_v32 = vld [vmem:[#allocation7 + $0xa0] sm:$0xff] }
  0x31   :  { %295 = vmatprep.subr.mxu1 %v185_v18  ;;  %v162_v33 = vld [vmem:[#allocation7 + $0x20] sm:$0xff]  ;;  %v177_v34 = vld [vmem:[#allocation7 + $0x98] sm:$0xff]  ;;  %v176_v36 = vld [vmem:[#allocation7 + $0x90] sm:$0xff] }
  0x32   :  { %296 = vmatpush3.msra.mxu1 %v169_v19  ;;  %v161_v35 = vld [vmem:[#allocation7 + $0x18] sm:$0xff]  ;;  %v160_v37 = vld [vmem:[#allocation7 + $0x10] sm:$0xff]  ;;  %v175_v38 = vld [vmem:[#allocation7 + $0x88] sm:$0xff] }
  0x33   :  { %297 = vmatprep.subr.mxu1 %v184_v20  ;;  %v159_v39 = vld [vmem:[#allocation7 + $0x8] sm:$0xff]  ;;  %v174_v40 = vld [vmem:[#allocation7 + $0x80] sm:$0xff]  ;;  %v69_v45 = vld [vmem:[%s477_s3] sm:$0x3]  ;;  %s275_s3 = sshll.u32 %s425_s13, 4  ;;  %s276_s3 = int_to_ptr.vmem [resolvable:$true] %s275_s3 }
  0x34   :  { %298 = vmatpush3.msra.mxu1 %v168_v21  ;;  %v158_v41 = vld [vmem:[#allocation7] sm:$0xff]  ;;  %v74_v47 = vrot.slane %v69_v45, %v73_v44  ;;  %v78_v48 = vrot.slane %v69_v45, %v77_v46  ;;  %v286_v56 = vld [vmem:[%s478_s4] ss:$0 sm:$0xff]  ;;  %s391_s14 = scalar_lea.vmem %s276_s3, 128  ;;  %p396_p2 = scmp.lt.s32.totalorder %s276_s3, %s276_s3 }
  0x35   :  { %299 = vmatprep.subr.mxu1 %v183_v22  ;;  %p392_p1 = scmp.ne.s32.totalorder %s276_s3, %s391_s14  ;;  %p397_p3 = scmp.lt.s32.totalorder %s391_s14, %s391_s14 }
  0x36   :  { %300 = vmatpush3.msra.mxu1 %v167_v23 }
  0x37   :  { %301 = vmatprep.subr.mxu1 %v182_v24  ;;  %p398_p4 = por %p397_p3, %p396_p2 }
  0x38   :  { %302 = vmatpush3.msra.mxu1 %v166_v25 }
  0x39   :  { %303 = vmatprep.subr.mxu1 %v181_v26  ;;  %p399_p5 = pnand %p398_p4, %p392_p1 }
  0x3a   :  { %304 = vmatpush3.msra.mxu1 %v165_v27 }
  0x3b   :  { %305 = vmatprep.subr.mxu1 %v180_v28 }
  0x3c   :  { %306 = vmatpush3.msra.mxu1 %v164_v29 }
  0x3d   :  { %307 = vmatprep.subr.mxu1 %v179_v30 }
  0x3e   :  { %308 = vmatpush3.msra.mxu1 %v163_v31 }
  0x3f   :  { %309 = vmatprep.subr.mxu1 %v178_v32 }
  0x40   :  { %310 = vmatpush3.msra.mxu1 %v162_v33 }
  0x41   :  { %311 = vmatprep.subr.mxu1 %v177_v34 }
  0x42   :  { %312 = vmatpush3.msra.mxu1 %v161_v35 }
  0x43   :  { %313 = vmatprep.subr.mxu1 %v176_v36 }
  0x44   :  { %314 = vmatpush3.msra.mxu1 %v160_v37 }
  0x45   :  { %315 = vmatprep.subr.mxu1 %v175_v38 }
  0x46   :  { %316 = vmatpush3.msra.mxu1 %v159_v39 }
  0x47   :  { %317 = vmatprep.subr.mxu1 %v174_v40 }
  0x48   :  { %318 = vmatpush3.msra.mxu1 %v158_v41 }
  0xef   :  { %v151_v49 = vpop.f32.mrf.mxu0 }
  0xf0   :  { %v152_v50 = vadd.f32 %v151_v49, %v74_v47 }
  0xf1   :  { %v153_v51 = vpop.f32.mrf.mxu0 }
  0xf2   :  { %v154_v52 = vadd.f32 %v153_v51, %v78_v48  ;;  %v156_v54 = vmax.f32 %v152_v50, 0.0 }
  0xf4   :  { %v157_v53 = vmax.f32 %v154_v52, 0.0 }
  0xf6   :  { %261 = vmatprep.mubr.f32.mxu1 %v157_v53 }
  0xf7   :  { %262 = vmatmul.mubr.f32.vlgmr.msra.gmra.mxu1 %v156_v54 }
 0x1b7   :  { %v319_v55 = vpop.f32.mrf.mxu1 }
 0x1b9   :  { %v320_v57 = vpop.f32.mrf.mxu1 }
 0x1ba   :  { %v321_v58 = vadd.f32 %v320_v57, %v319_v55 }
 0x1bc   :  { %v264_v59 = vadd.f32 %v321_v58, %v286_v56 }
 0x1be   :  { %v267_v60 = vmax.f32 %v264_v59, 0.0 }
 0x1c0   :  { %268 = vst [vmem:[#allocation8] sm:$0xff] %v267_v60 }
 0x1c1   :  { %402 = shalt.err (!%p399_p5)
}
 0x1c2   :  { %278 = dma.vmem_to_hbm [thread:$0]  %s276_s3, 128, %s479_s5, [#allocation4]  }
 0x1c3   :  { %415 = dma.done.wait [#allocation4], 128  }
 0x1c4   :  { %416 = vsyncadd [#allocation4], 4294967168 }
 0x1c5   :  { %282 = vsyncpa [#allocation3], 1 }
 0x1c6   :  { %283 = vsyncpa [#allocation6], 1 }
 0x1c7   :  { %284 = vsyncpa [#allocation4], 1 }

</bundles_post_ra>
